<compile_context>
chip_gen: v6e
topology: v6e:2x2x1
jax: 0.10.0
libtpu: 0.0.40
codegen_flags: <defaults>
</compile_context>

<pallas_src>
import functools

import jax
import jax.numpy as jnp
from jax.experimental import pallas as pl
from jax.experimental.pallas import tpu as pltpu


def _round_up(x: int, m: int) -> int:
    return ((x + m - 1) // m) * m


def ffn_kernel(x_ref, w1_ref, b1_ref, w2_ref, b2_ref, o_ref):
    # x_ref:  (tm, Ep)   bf16 tile of tokens
    # w1_ref: (Ep, Hp)   bf16 (resident across the grid)
    # b1_ref: (1, Hp)    f32
    # w2_ref: (Hp, Ep)   bf16 (resident across the grid)
    # b2_ref: (1, Ep)    f32
    # o_ref:  (tm, Ep)   output tile (f32)
    x = x_ref[...]
    h = jnp.dot(x, w1_ref[...], preferred_element_type=jnp.float32) + b1_ref[...]
    h = jnp.maximum(h, 0.0)                                    # ReLU on VPU (f32)
    y = jnp.dot(h.astype(w2_ref.dtype), w2_ref[...],
                preferred_element_type=jnp.float32) + b2_ref[...]
    o_ref[...] = y.astype(o_ref.dtype)


@functools.partial(jax.jit, static_argnames=("tile_m",))
def feed_forward(x, w1, b1, w2, b2, *, tile_m=256):
    """x: (B, T, E) -> (B, T, E).  Eval-mode FeedForward forward pass."""
    B, T, E = x.shape
    H = w1.shape[1]                      # 4 * E
    M = B * T

    compute_dtype = jnp.bfloat16
    out_dtype = x.dtype

    # Lane-dense feature dims (multiple of 128) -> unmasked stores, full MXU lanes.
    Ep = _round_up(E, 128)
    Hp = _round_up(H, 128)

    # Token tile: multiple of 16 (bf16 sublane packing), no larger than needed.
    tm = min(tile_m, _round_up(M, 16))
    tm = _round_up(tm, 16)
    Mp = _round_up(M, tm)
    grid_m = Mp // tm

    # Wrapper-side padding (zeros) so the kernel is branch-free.
    x2 = jnp.pad(x.reshape(M, E).astype(compute_dtype),
                 ((0, Mp - M), (0, Ep - E)))
    w1p = jnp.pad(w1.astype(compute_dtype), ((0, Ep - E), (0, Hp - H)))
    w2p = jnp.pad(w2.astype(compute_dtype), ((0, Hp - H), (0, Ep - E)))
    b1p = jnp.pad(b1.astype(jnp.float32), (0, Hp - H)).reshape(1, Hp)
    b2p = jnp.pad(b2.astype(jnp.float32), (0, Ep - E)).reshape(1, Ep)

    # VMEM budget: double-buffered resident weights + double-buffered x/out tiles
    # + biases + in-kernel f32 intermediates.  Capped at 64 MiB (v7x physical).
    cb = jnp.dtype(compute_dtype).itemsize
    ob = jnp.dtype(out_dtype).itemsize
    vmem_needed = (2 * (Ep * Hp + Hp * Ep) * cb     # W1, W2 (double-buffered)
                   + 2 * tm * Ep * cb               # x tile (double-buffered)
                   + 2 * tm * Ep * ob               # out tile (double-buffered)
                   + 2 * (Hp + Ep) * 4              # biases
                   + tm * Hp * 4 + tm * Ep * 4)     # h / y intermediates
    vmem_limit = int(min(max(2 * vmem_needed, 32 * 1024 * 1024),
                         64 * 1024 * 1024))

    cost = pl.CostEstimate(
        flops=2 * Mp * Ep * Hp * 2,                       # two matmuls
        transcendentals=0,
        bytes_accessed=(x2.size * cb + w1p.size * cb + w2p.size * cb
                        + b1p.size * 4 + b2p.size * 4 + Mp * Ep * ob),
    )

    out2 = pl.pallas_call(
        ffn_kernel,
        out_shape=jax.ShapeDtypeStruct((Mp, Ep), out_dtype),
        grid_spec=pltpu.PrefetchScalarGridSpec(
            num_scalar_prefetch=0,
            grid=(grid_m,),
            in_specs=[
                pl.BlockSpec((tm, Ep), lambda i: (i, 0)),   # x tile
                pl.BlockSpec((Ep, Hp), lambda i: (0, 0)),   # W1 (resident)
                pl.BlockSpec((1, Hp), lambda i: (0, 0)),    # b1
                pl.BlockSpec((Hp, Ep), lambda i: (0, 0)),   # W2 (resident)
                pl.BlockSpec((1, Ep), lambda i: (0, 0)),    # b2
            ],
            out_specs=pl.BlockSpec((tm, Ep), lambda i: (i, 0)),
        ),
        compiler_params=pltpu.CompilerParams(
            dimension_semantics=("parallel",),
            vmem_limit_bytes=vmem_limit,
        ),
        cost_estimate=cost,
    )(x2, w1p, b1p, w2p, b2p)

    # Drop padded rows/cols, restore (B, T, E).
    return out2[:M, :E].reshape(B, T, E)


if __name__ == "__main__":
    # config: n_embd = 32 (dropout_percent irrelevant in eval mode)
    n_embd = 32
    hidden = 4 * n_embd
    B, T = 2, 8

    key = jax.random.PRNGKey(0)
    kx, kw1, kb1, kw2, kb2 = jax.random.split(key, 5)

    x = jax.random.normal(kx, (B, T, n_embd), dtype=jnp.float32)
    # Deterministic "Linear" params, stored as (in, out).
    w1 = jax.random.normal(kw1, (n_embd, hidden), dtype=jnp.float32) * 0.02
    b1 = jax.random.normal(kb1, (hidden,), dtype=jnp.float32) * 0.02
    w2 = jax.random.normal(kw2, (hidden, n_embd), dtype=jnp.float32) * 0.02
    b2 = jax.random.normal(kb2, (n_embd,), dtype=jnp.float32) * 0.02

    out = feed_forward(x, w1, b1, w2, b2)
    out = jax.block_until_ready(out)

    # Pure-JAX f32 reference (eval-mode dropout == identity).  Tolerance is
    # loosened because the kernel runs the matmuls with bf16 inputs.
    ref = jnp.maximum(x @ w1 + b1, 0.0) @ w2 + b2
    assert out.shape == (B, T, n_embd)
    assert jnp.allclose(out, ref, atol=1e-2, rtol=1e-2), (
        float(jnp.max(jnp.abs(out - ref))))

    print("KERNEL_OK")
</pallas_src>

<mosaic_0001>
module attributes {stable_mosaic.version = 11 : i64} {
  func.func @ffn_kernel(%arg0: i32, %arg1: memref<16x128xbf16, #tpu.memory_space<vmem>>, %arg2: memref<128x128xbf16, #tpu.memory_space<vmem>>, %arg3: memref<1x128xf32, #tpu.memory_space<vmem>>, %arg4: memref<128x128xbf16, #tpu.memory_space<vmem>>, %arg5: memref<1x128xf32, #tpu.memory_space<vmem>>, %arg6: memref<16x128xf32, #tpu.memory_space<vmem>>) attributes {dimension_semantics = [#tpu.dimension_semantics<parallel>], iteration_bounds = array<i64: 1>, scalar_prefetch = 0 : i64, scratch_operands = 0 : i64, tpu.core_type = #tpu.core_type<tc>, window_params = [{transform_indices = @transform_0, window_bounds = array<i64: 16, 128>}, {pipeline_mode = #tpu.pipeline_mode<synchronous>, transform_indices = @transform_1, window_bounds = array<i64: 128, 128>}, {pipeline_mode = #tpu.pipeline_mode<synchronous>, transform_indices = @transform_2, window_bounds = array<i64: 1, 128>}, {pipeline_mode = #tpu.pipeline_mode<synchronous>, transform_indices = @transform_3, window_bounds = array<i64: 128, 128>}, {pipeline_mode = #tpu.pipeline_mode<synchronous>, transform_indices = @transform_4, window_bounds = array<i64: 1, 128>}, {transform_indices = @transform_5, window_bounds = array<i64: 16, 128>}]} {
    %c0 = arith.constant 0 : index
    %c0_0 = arith.constant 0 : index
    %0 = vector.load %arg1[%c0, %c0_0] : memref<16x128xbf16, #tpu.memory_space<vmem>>, vector<16x128xbf16>
    %c0_1 = arith.constant 0 : index
    %c0_2 = arith.constant 0 : index
    %1 = vector.load %arg2[%c0_1, %c0_2] : memref<128x128xbf16, #tpu.memory_space<vmem>>, vector<128x128xbf16>
    %cst = arith.constant dense<0.000000e+00> : vector<16x128xf32>
    %2 = tpu.matmul %0, %1, %cst {dimension_numbers = #tpu.dot_dimension_numbers<[1], [0], [0], [1], [0, 0, 1, 1], [], []>} : vector<16x128xbf16>, vector<128x128xbf16>, vector<16x128xf32> -> vector<16x128xf32>
    %c0_3 = arith.constant 0 : index
    %c0_4 = arith.constant 0 : index
    %3 = vector.load %arg3[%c0_3, %c0_4] : memref<1x128xf32, #tpu.memory_space<vmem>>, vector<1x128xf32>
    %4 = vector.broadcast %3 : vector<1x128xf32> to vector<16x128xf32>
    %5 = arith.addf %2, %4 : vector<16x128xf32>
    %cst_5 = arith.constant 0.000000e+00 : f32
    %6 = vector.broadcast %cst_5 : f32 to vector<16x128xf32>
    %7 = arith.maximumf %5, %6 : vector<16x128xf32>
    %8 = arith.truncf %7 : vector<16x128xf32> to vector<16x128xbf16>
    %c0_6 = arith.constant 0 : index
    %c0_7 = arith.constant 0 : index
    %9 = vector.load %arg4[%c0_6, %c0_7] : memref<128x128xbf16, #tpu.memory_space<vmem>>, vector<128x128xbf16>
    %cst_8 = arith.constant dense<0.000000e+00> : vector<16x128xf32>
    %10 = tpu.matmul %8, %9, %cst_8 {dimension_numbers = #tpu.dot_dimension_numbers<[1], [0], [0], [1], [0, 0, 1, 1], [], []>} : vector<16x128xbf16>, vector<128x128xbf16>, vector<16x128xf32> -> vector<16x128xf32>
    %c0_9 = arith.constant 0 : index
    %c0_10 = arith.constant 0 : index
    %11 = vector.load %arg5[%c0_9, %c0_10] : memref<1x128xf32, #tpu.memory_space<vmem>>, vector<1x128xf32>
    %12 = vector.broadcast %11 : vector<1x128xf32> to vector<16x128xf32>
    %13 = arith.addf %10, %12 : vector<16x128xf32>
    %c0_11 = arith.constant 0 : index
    %c0_12 = arith.constant 0 : index
    %14 = vector.load %arg6[%c0_11, %c0_12] : memref<16x128xf32, #tpu.memory_space<vmem>>, vector<16x128xf32>
    tpu.vector_store %arg6[%c0_11, %c0_12], %13 {strides = array<i32>} : memref<16x128xf32, #tpu.memory_space<vmem>>, vector<16x128xf32>,
    return
  }
  func.func @transform_0(%arg0: i32) -> (i32, i32) {
    %c0_i32 = arith.constant 0 : i32
    %c0_i32_0 = arith.constant 0 : i32
    return %arg0, %c0_i32 : i32, i32
  }
  func.func @transform_1(%arg0: i32) -> (i32, i32) {
    %c0_i32 = arith.constant 0 : i32
    %c0_i32_0 = arith.constant 0 : i32
    %c0_i32_1 = arith.constant 0 : i32
    return %c0_i32, %c0_i32_0 : i32, i32
  }
  func.func @transform_2(%arg0: i32) -> (i32, i32) {
    %c0_i32 = arith.constant 0 : i32
    %c0_i32_0 = arith.constant 0 : i32
    %c0_i32_1 = arith.constant 0 : i32
    return %c0_i32, %c0_i32_0 : i32, i32
  }
  func.func @transform_3(%arg0: i32) -> (i32, i32) {
    %c0_i32 = arith.constant 0 : i32
    %c0_i32_0 = arith.constant 0 : i32
    %c0_i32_1 = arith.constant 0 : i32
    return %c0_i32, %c0_i32_0 : i32, i32
  }
  func.func @transform_4(%arg0: i32) -> (i32, i32) {
    %c0_i32 = arith.constant 0 : i32
    %c0_i32_0 = arith.constant 0 : i32
    %c0_i32_1 = arith.constant 0 : i32
    return %c0_i32, %c0_i32_0 : i32, i32
  }
  func.func @transform_5(%arg0: i32) -> (i32, i32) {
    %c0_i32 = arith.constant 0 : i32
    %c0_i32_0 = arith.constant 0 : i32
    return %arg0, %c0_i32 : i32, i32
  }
}

</mosaic_0001>

<bundles_post_ra>
// kernel: feed_forward.1
= control target key start
LH: loop header
LB: loop body
LE: loop exit
PB: predicated region body
PF: predicated region fallthrough
CT: control target
= control target key end

     0   :  { %v358_v0 = vmov 0.0   ;;  %vm359_vm0 = vmmov 0   ;;  %s453_s1 = inlined_call_operand.vmem [shape: bf16[128,128], index: 1, kind: input, shape index: {}]   ;;  %s454_s3 = inlined_call_operand.vmem [shape: bf16[128,128], index: 3, kind: input, shape index: {}]   ;;  %s455_s0 = inlined_call_operand.vmem [shape: bf16[16,128], index: 0, kind: input, shape index: {}]   ;;  %s456_s2 = inlined_call_operand.vmem [shape: f32[1,128], index: 2, kind: input, shape index: {}]   ;;  %s457_s4 = inlined_call_operand.vmem [shape: f32[1,128], index: 4, kind: input, shape index: {}]   ;;  %s458_s5 = inlined_call_operand.vmem [shape: f32[16,128], index: 5, kind: output, shape index: {}]  }
   0x1   :  { %299 = vmatprep.subr.bf16.mxu0 %v358_v0  ;;  %v341_v1 = vld [vmem:[%s453_s1 + $0x38] sm:$0xff]   ;;  %315 = vmatprep.mubr.msk.bf16.mxu0 %vm359_vm0, %v358_v0  ;;  %v342_v2 = vld [vmem:[%s453_s1 + $0x30] sm:$0xff]   ;;  %v343_v3 = vld [vmem:[%s453_s1 + $0x28] sm:$0xff]  }
   0x2   :  { %319 = vmatprep.subr.bf16.mxu1 %v358_v0  ;;  %335 = vmatprep.mubr.msk.bf16.mxu1 %vm359_vm0, %v358_v0  ;;  %v350_v4 = vld [vmem:[%s454_s3 + $0x38] sm:$0xff]   ;;  %v344_v5 = vld [vmem:[%s453_s1 + $0x20] sm:$0xff]   ;;  %v351_v6 = vld [vmem:[%s454_s3 + $0x30] sm:$0xff]  }
   0x3   :  { %300 = vmatpush3.bf16.msra.mxu0 %v341_v1  ;;  %320 = vmatpush3.bf16.msra.mxu1 %v350_v4  ;;  %v345_v7 = vld [vmem:[%s453_s1 + $0x18] sm:$0xff]   ;;  %v352_v8 = vld [vmem:[%s454_s3 + $0x28] sm:$0xff]   ;;  %v346_v9 = vld [vmem:[%s453_s1 + $0x10] sm:$0xff]  }
   0x4   :  { %301 = vmatprep.subr.bf16.mxu0 %v358_v0  ;;  %321 = vmatprep.subr.bf16.mxu1 %v358_v0  ;;  %v353_v10 = vld [vmem:[%s454_s3 + $0x20] sm:$0xff]   ;;  %v347_v11 = vld [vmem:[%s453_s1 + $0x8] sm:$0xff]   ;;  %v354_v12 = vld [vmem:[%s454_s3 + $0x18] sm:$0xff]  }
   0x5   :  { %v348_v13 = vld [vmem:[%s453_s1] sm:$0xff]   ;;  %v355_v15 = vld [vmem:[%s454_s3 + $0x10] sm:$0xff]   ;;  %v356_v16 = vld [vmem:[%s454_s3 + $0x8] sm:$0xff]  }
   0x6   :  { %v349_v14 = vld [vmem:[%s455_s0] sm:$0xff]  }
   0x7   :  { %302 = vmatpush3.bf16.msra.mxu0 %v342_v2  ;;  %322 = vmatpush3.bf16.msra.mxu1 %v351_v6  ;;  %v357_v17 = vld [vmem:[%s454_s3] sm:$0xff]  }
   0x8   :  { %303 = vmatprep.subr.bf16.mxu0 %v358_v0  ;;  %323 = vmatprep.subr.bf16.mxu1 %v358_v0  ;;  %v262_v18 = vld [vmem:[%s456_s2] ss:$0 sm:$0xff] }
   0x9   :  { %v272_v28 = vld [vmem:[%s457_s4] ss:$0 sm:$0xff] }
   0xb   :  { %304 = vmatpush3.bf16.msra.mxu0 %v343_v3  ;;  %324 = vmatpush3.bf16.msra.mxu1 %v352_v8 }
   0xc   :  { %305 = vmatprep.subr.bf16.mxu0 %v358_v0  ;;  %325 = vmatprep.subr.bf16.mxu1 %v358_v0 }
   0xf   :  { %306 = vmatpush3.bf16.msra.mxu0 %v344_v5  ;;  %326 = vmatpush3.bf16.msra.mxu1 %v353_v10 }
  0x10   :  { %307 = vmatprep.subr.bf16.mxu0 %v358_v0  ;;  %327 = vmatprep.subr.bf16.mxu1 %v358_v0 }
  0x13   :  { %308 = vmatpush3.bf16.msra.mxu0 %v345_v7  ;;  %328 = vmatpush3.bf16.msra.mxu1 %v354_v12 }
  0x14   :  { %309 = vmatprep.subr.bf16.mxu0 %v358_v0  ;;  %329 = vmatprep.subr.bf16.mxu1 %v358_v0 }
  0x17   :  { %310 = vmatpush3.bf16.msra.mxu0 %v346_v9  ;;  %330 = vmatpush3.bf16.msra.mxu1 %v355_v15 }
  0x18   :  { %311 = vmatprep.subr.bf16.mxu0 %v358_v0  ;;  %331 = vmatprep.subr.bf16.mxu1 %v358_v0 }
  0x1b   :  { %312 = vmatpush3.bf16.msra.mxu0 %v347_v11  ;;  %332 = vmatpush3.bf16.msra.mxu1 %v356_v16 }
  0x1c   :  { %313 = vmatprep.subr.bf16.mxu0 %v358_v0  ;;  %333 = vmatprep.subr.bf16.mxu1 %v358_v0 }
  0x1f   :  { %314 = vmatpush3.bf16.msra.mxu0 %v348_v13  ;;  %334 = vmatpush3.bf16.msra.mxu1 %v357_v17 }
  0x22   :  { %316 = vmatmul.mubr.bf16.vlgmr.msra.gmra.mxu0 %v349_v14 }
  0xe2   :  { %v134_v19 = vpop.f32.mrf.mxu0 }
  0xe3   :  { %v135_v21 = vadd.f32 %v262_v18, %v134_v19 }
  0xe4   :  { %v317_v20 = vpop.f32.mrf.mxu0 }
  0xe5   :  { %v141_v25 = vmax.f32 %v135_v21, 0.0 }
  0xe6   :  { %v137_v22 = vpop.f32.mrf.mxu0 }
  0xe7   :  { %v138_v23 = vadd.f32 %v262_v18, %v137_v22 }
  0xe8   :  { %v318_v24 = vpop.f32.mrf.mxu0 }
  0xe9   :  { %v142_v26 = vmax.f32 %v138_v23, 0.0 }
  0xeb   :  { %v143_v27 = vpack.c.bf16 %v142_v26, %v141_v25 }
  0xed   :  { %336 = vmatmul.mubr.bf16.vlgmr.msra.gmra.mxu1 %v143_v27 }
 0x1ad   :  { %v249_v29 = vpop.f32.mrf.mxu1 }
 0x1ae   :  { %v250_v30 = vadd.f32 %v272_v28, %v249_v29 }
 0x1af   :  { %v337_v31 = vpop.f32.mrf.mxu1 }
 0x1b0   :  { %256 = vst [vmem:[%s458_s5] sm:$0xff] %v250_v30 }
 0x1b1   :  { %v252_v32 = vpop.f32.mrf.mxu1 }
 0x1b2   :  { %v253_v33 = vadd.f32 %v272_v28, %v252_v32 }
 0x1b3   :  { %v338_v34 = vpop.f32.mrf.mxu1 }
 0x1b4   :  { %257 = vst [vmem:[%s458_s5 + $0x8] sm:$0xff] %v253_v33 }

</bundles_post_ra>
